<compile_context>
chip_gen: v7x
topology: tpu7x:2x2x1
jax: 0.10.0
libtpu: 0.0.40
codegen_flags: <defaults>
</compile_context>

<pallas_src>
import jax
import jax.numpy as jnp
from jax.experimental import pallas as pl
from jax.experimental.pallas import tpu as pltpu

# ---- small synthetic config (mirrors Configargs / bert config fields) ----
BERT_DIM = 32        # configargs.bert_dim
NUM_REL = 4          # configargs.num_rel
TAG_SIZE = 4         # configargs.tag_size
WORD_VOCAB = 50      # config.word_vocab_size
WORD_EMBED_DIM = 32  # config.word_embed_dim
TOKEN_VOCAB = 64
B, L = 2, 8          # batch, seq_len
W_PER_TOK = 3        # lexicon words per token (word_ids / word_mask width)
RT = NUM_REL * TAG_SIZE


# ---------------------------- Pallas kernel ----------------------------
def triple_score_kernel(seq_ref, wp_ref, bp_ref, wr_ref, br_ref, out_ref):
    # seq_ref : (L, D)    bf16 -- sequence_output for this batch element
    # wp_ref  : (D, 6D)   bf16 -- [Wp_head | Wp_tail] fused projection weight
    # bp_ref  : (1, 3D)   f32  -- project_matrix bias
    # wr_ref  : (3D, RT)  bf16 -- relation_linear weight^T
    # br_ref  : (1, RT)   f32  -- relation_linear bias
    # out_ref : (L, L*RT) f32  -- lane-dense scores; out[i, j*RT + r]
    Lk, _ = seq_ref.shape
    H = bp_ref.shape[1]                                    # 3D

    seq = seq_ref[...]                                     # (L, D)
    # Single fused projection per batch (hoisted out of the pair loop):
    #   proj[:, :3D] = seq @ Wp_head ; proj[:, 3D:] = seq @ Wp_tail
    proj = jnp.dot(seq, wp_ref[...],
                   preferred_element_type=jnp.float32)     # (L, 6D) f32
    hp = proj[:, :H] + bp_ref[...]                         # head proj + bias
    tp = proj[:, H:]                                       # tail proj

    wr = wr_ref[...]
    br = br_ref[...]

    # dropout_2 is identity under deterministic / eval semantics.
    blocks = []
    for j in range(Lk):                    # static unroll over tail positions
        pair = hp + tp[j:j + 1, :]                         # (L, 3D) head i, tail j
        h = jnp.maximum(pair, 0.0).astype(jnp.bfloat16)    # ReLU
        blocks.append(jnp.dot(h, wr,
                              preferred_element_type=jnp.float32) + br)  # (L, RT)
    # Concatenate along lanes -> one full-width (L, L*RT) store.
    out_ref[...] = jnp.concatenate(blocks, axis=-1)


def triple_score(seq, wp, bp, wr, br):
    """seq: (B, L, D) f32; wp: (3D, 2D); bp: (3D,); wr: (RT, 3D); br: (RT,).

    Returns lane-dense scores of shape (B, L, L*RT) where
    out[b, i, j*RT + r] = relation_linear(relu(project_matrix([seq_i|seq_j])))[r].
    """
    Bt, Lt, D = seq.shape
    rt = wr.shape[0]
    H = wp.shape[0]                       # 3D
    wpT = wp.T                            # (2D, 3D)
    # Fuse head / tail halves into one (D, 6D) weight -> single MXU matmul.
    wp_fused = jnp.concatenate([wpT[:D], wpT[D:]], axis=1).astype(jnp.bfloat16)
    wrT = wr.T.astype(jnp.bfloat16)       # (3D, RT)
    bp2 = bp.reshape(1, -1).astype(jnp.float32)
    br2 = br.reshape(1, -1).astype(jnp.float32)
    seq_b = seq.astype(jnp.bfloat16)

    return pl.pallas_call(
        triple_score_kernel,
        out_shape=jax.ShapeDtypeStruct((Bt, Lt, Lt * rt), jnp.float32),
        grid_spec=pltpu.PrefetchScalarGridSpec(
            num_scalar_prefetch=0,
            grid=(Bt,),                   # one grid step per batch element
            in_specs=[
                pl.BlockSpec((None, Lt, D), lambda b: (b, 0, 0)),
                pl.BlockSpec((D, 2 * H), lambda b: (0, 0)),
                pl.BlockSpec((1, H), lambda b: (0, 0)),
                pl.BlockSpec((H, rt), lambda b: (0, 0)),
                pl.BlockSpec((1, rt), lambda b: (0, 0)),
            ],
            out_specs=pl.BlockSpec((None, Lt, Lt * rt), lambda b: (b, 0, 0)),
        ),
        compiler_params=pltpu.CompilerParams(
            dimension_semantics=("parallel",)),   # batch across TensorCores
    )(seq_b, wp_fused, bp2, wrT, br2)


# ------------------------------ glue ------------------------------------
def encode_stub(input_ids, attention_mask, word_ids, word_mask,
                tok_emb, word_emb):
    # TODO(synk): LEBertModel.from_pretrained (lexicon-enhanced BERT) has no
    # clean Pallas equivalent here; replaced with a deterministic
    # embedding-fusion stub producing a (B, L, bert_dim) sequence_output.
    tok = tok_emb[input_ids]                                   # (B, L, D)
    w = word_emb[word_ids]                                     # (B, L, W, De)
    denom = jnp.maximum(word_mask.sum(-1, keepdims=True), 1.0)
    w = (w * word_mask[..., None]).sum(2) / denom              # (B, L, De)
    return ((tok + w) * attention_mask[..., None]).astype(jnp.float32)


def asare_forward(data, params, train=True):
    seq = encode_stub(data['input_ids'], data['attention_mask'],
                      data['word_ids'], data['word_mask'],
                      params['tok_emb'], params['word_emb'])
    # self.dropout(0.2): identity under deterministic / eval semantics
    score = triple_score(seq, params['wp'], params['bp'],
                         params['wr'], params['br'])           # (B, L, L*RT)
    Bt, Lt = seq.shape[0], seq.shape[1]
    mat = score.reshape(Bt, Lt, Lt, NUM_REL, TAG_SIZE)
    if train:
        return jnp.transpose(mat, (0, 4, 3, 1, 2))             # (B, T, R, L, L)
    return jnp.transpose(jnp.argmax(mat, axis=-1), (0, 3, 1, 2))


def triple_score_ref(seq, wp, bp, wr, br):
    """Pure-JAX reference mirroring the torch concat formulation (same bf16
    operand casts / f32 accumulation as the kernel)."""
    Bt, Lt, D = seq.shape
    seq_b = seq.astype(jnp.bfloat16)
    head = jnp.broadcast_to(seq_b[:, :, None, :],
                            (Bt, Lt, Lt, D)).reshape(Bt, Lt * Lt, D)
    tail = jnp.tile(seq_b, (1, Lt, 1))
    pair = jnp.concatenate([head, tail], axis=-1)              # (B, L*L, 2D)
    proj = jnp.dot(pair, wp.T.astype(jnp.bfloat16),
                   preferred_element_type=jnp.float32) + bp
    h = jnp.maximum(proj, 0.0).astype(jnp.bfloat16)
    score = jnp.dot(h, wr.T.astype(jnp.bfloat16),
                    preferred_element_type=jnp.float32) + br
    return score.reshape(Bt, Lt, Lt, -1)


# ------------------------------ main ------------------------------------
if __name__ == "__main__":
    key = jax.random.PRNGKey(0)
    keys = jax.random.split(key, 10)
    D = BERT_DIM

    params = {
        'tok_emb':  0.1 * jax.random.normal(keys[0], (TOKEN_VOCAB, D), jnp.float32),
        'word_emb': 0.1 * jax.random.normal(keys[1], (WORD_VOCAB, WORD_EMBED_DIM), jnp.float32),
        # project_matrix: Linear(2D -> 3D); relation_linear: Linear(3D -> R*T)
        'wp': jax.random.uniform(keys[2], (3 * D, 2 * D), jnp.float32,
                                 -1.0 / (2 * D) ** 0.5, 1.0 / (2 * D) ** 0.5),
        'bp': jax.random.uniform(keys[3], (3 * D,), jnp.float32,
                                 -1.0 / (2 * D) ** 0.5, 1.0 / (2 * D) ** 0.5),
        'wr': jax.random.uniform(keys[4], (RT, 3 * D), jnp.float32,
                                 -1.0 / (3 * D) ** 0.5, 1.0 / (3 * D) ** 0.5),
        'br': jax.random.uniform(keys[5], (RT,), jnp.float32,
                                 -1.0 / (3 * D) ** 0.5, 1.0 / (3 * D) ** 0.5),
    }

    data = {
        'input_ids': jax.random.randint(keys[6], (B, L), 0, TOKEN_VOCAB),
        'attention_mask': jnp.ones((B, L), jnp.float32),
        'word_ids': jax.random.randint(keys[7], (B, L, W_PER_TOK), 0, WORD_VOCAB),
        'word_mask': (jax.random.uniform(keys[8], (B, L, W_PER_TOK)) > 0.3
                      ).astype(jnp.float32),
    }

    out = asare_forward(data, params, train=True)
    out = jax.block_until_ready(out)
    assert out.shape == (B, TAG_SIZE, NUM_REL, L, L), out.shape

    # correctness check of the Pallas hot path against a pure-JAX reference
    seq = encode_stub(data['input_ids'], data['attention_mask'],
                      data['word_ids'], data['word_mask'],
                      params['tok_emb'], params['word_emb'])
    ref = triple_score_ref(seq, params['wp'], params['bp'],
                           params['wr'], params['br'])
    ref = jnp.transpose(ref.reshape(B, L, L, NUM_REL, TAG_SIZE),
                        (0, 4, 3, 1, 2))
    assert jnp.allclose(out, ref, atol=1e-3, rtol=1e-3), \
        float(jnp.max(jnp.abs(out - ref)))

    print("KERNEL_OK")
</pallas_src>

<mosaic_0001>
module attributes {stable_mosaic.version = 11 : i64} {
  func.func @triple_score_kernel(%arg0: i32, %arg1: memref<1x8x32xbf16, #tpu.memory_space<vmem>>, %arg2: memref<32x192xbf16, #tpu.memory_space<vmem>>, %arg3: memref<1x96xf32, #tpu.memory_space<vmem>>, %arg4: memref<96x16xbf16, #tpu.memory_space<vmem>>, %arg5: memref<1x16xf32, #tpu.memory_space<vmem>>, %arg6: memref<1x8x128xf32, #tpu.memory_space<vmem>>) attributes {dimension_semantics = [#tpu.dimension_semantics<parallel>], iteration_bounds = array<i64: 2>, scalar_prefetch = 0 : i64, scratch_operands = 0 : i64, tpu.core_type = #tpu.core_type<tc>, window_params = [{transform_indices = @transform_0, window_bounds = array<i64: 1, 8, 32>}, {pipeline_mode = #tpu.pipeline_mode<synchronous>, transform_indices = @transform_1, window_bounds = array<i64: 32, 192>}, {pipeline_mode = #tpu.pipeline_mode<synchronous>, transform_indices = @transform_2, window_bounds = array<i64: 1, 96>}, {pipeline_mode = #tpu.pipeline_mode<synchronous>, transform_indices = @transform_3, window_bounds = array<i64: 96, 16>}, {pipeline_mode = #tpu.pipeline_mode<synchronous>, transform_indices = @transform_4, window_bounds = array<i64: 1, 16>}, {transform_indices = @transform_5, window_bounds = array<i64: 1, 8, 128>}]} {
    %c0 = arith.constant 0 : index
    %c0_0 = arith.constant 0 : index
    %c0_1 = arith.constant 0 : index
    %0 = vector.load %arg1[%c0, %c0_0, %c0_1] : memref<1x8x32xbf16, #tpu.memory_space<vmem>>, vector<1x8x32xbf16>
    %1 = vector.shape_cast %0 : vector<1x8x32xbf16> to vector<8x32xbf16>
    %c0_2 = arith.constant 0 : index
    %c0_3 = arith.constant 0 : index
    %2 = vector.load %arg2[%c0_2, %c0_3] : memref<32x192xbf16, #tpu.memory_space<vmem>>, vector<32x192xbf16>
    %cst = arith.constant dense<0.000000e+00> : vector<8x192xf32>
    %3 = tpu.matmul %1, %2, %cst {dimension_numbers = #tpu.dot_dimension_numbers<[1], [0], [0], [1], [0, 0, 1, 1], [], []>} : vector<8x32xbf16>, vector<32x192xbf16>, vector<8x192xf32> -> vector<8x192xf32>
    %4 = vector.extract_strided_slice %3 {offsets = [0, 0], sizes = [8, 96], strides = [1, 1]} : vector<8x192xf32> to vector<8x96xf32>
    %c0_4 = arith.constant 0 : index
    %c0_5 = arith.constant 0 : index
    %5 = vector.load %arg3[%c0_4, %c0_5] : memref<1x96xf32, #tpu.memory_space<vmem>>, vector<1x96xf32>
    %6 = vector.broadcast %5 : vector<1x96xf32> to vector<8x96xf32>
    %7 = arith.addf %4, %6 : vector<8x96xf32>
    %8 = vector.extract_strided_slice %3 {offsets = [0, 96], sizes = [8, 96], strides = [1, 1]} : vector<8x192xf32> to vector<8x96xf32>
    %c0_6 = arith.constant 0 : index
    %c0_7 = arith.constant 0 : index
    %9 = vector.load %arg4[%c0_6, %c0_7] : memref<96x16xbf16, #tpu.memory_space<vmem>>, vector<96x16xbf16>
    %c0_8 = arith.constant 0 : index
    %c0_9 = arith.constant 0 : index
    %10 = vector.load %arg5[%c0_8, %c0_9] : memref<1x16xf32, #tpu.memory_space<vmem>>, vector<1x16xf32>
    %11 = vector.extract_strided_slice %8 {offsets = [0, 0], sizes = [1, 96], strides = [1, 1]} : vector<8x96xf32> to vector<1x96xf32>
    %12 = vector.broadcast %11 : vector<1x96xf32> to vector<8x96xf32>
    %13 = arith.addf %7, %12 : vector<8x96xf32>
    %cst_10 = arith.constant 0.000000e+00 : f32
    %14 = vector.broadcast %cst_10 : f32 to vector<8x96xf32>
    %15 = arith.maximumf %13, %14 : vector<8x96xf32>
    %16 = arith.truncf %15 : vector<8x96xf32> to vector<8x96xbf16>
    %cst_11 = arith.constant dense<0.000000e+00> : vector<8x16xf32>
    %17 = tpu.matmul %16, %9, %cst_11 {dimension_numbers = #tpu.dot_dimension_numbers<[1], [0], [0], [1], [0, 0, 1, 1], [], []>} : vector<8x96xbf16>, vector<96x16xbf16>, vector<8x16xf32> -> vector<8x16xf32>
    %18 = vector.broadcast %10 : vector<1x16xf32> to vector<8x16xf32>
    %19 = arith.addf %17, %18 : vector<8x16xf32>
    %20 = vector.extract_strided_slice %8 {offsets = [1, 0], sizes = [1, 96], strides = [1, 1]} : vector<8x96xf32> to vector<1x96xf32>
    %21 = vector.broadcast %20 : vector<1x96xf32> to vector<8x96xf32>
    %22 = arith.addf %7, %21 : vector<8x96xf32>
    %cst_12 = arith.constant 0.000000e+00 : f32
    %23 = vector.broadcast %cst_12 : f32 to vector<8x96xf32>
    %24 = arith.maximumf %22, %23 : vector<8x96xf32>
    %25 = arith.truncf %24 : vector<8x96xf32> to vector<8x96xbf16>
    %cst_13 = arith.constant dense<0.000000e+00> : vector<8x16xf32>
    %26 = tpu.matmul %25, %9, %cst_13 {dimension_numbers = #tpu.dot_dimension_numbers<[1], [0], [0], [1], [0, 0, 1, 1], [], []>} : vector<8x96xbf16>, vector<96x16xbf16>, vector<8x16xf32> -> vector<8x16xf32>
    %27 = vector.broadcast %10 : vector<1x16xf32> to vector<8x16xf32>
    %28 = arith.addf %26, %27 : vector<8x16xf32>
    %29 = vector.extract_strided_slice %8 {offsets = [2, 0], sizes = [1, 96], strides = [1, 1]} : vector<8x96xf32> to vector<1x96xf32>
    %30 = vector.broadcast %29 : vector<1x96xf32> to vector<8x96xf32>
    %31 = arith.addf %7, %30 : vector<8x96xf32>
    %cst_14 = arith.constant 0.000000e+00 : f32
    %32 = vector.broadcast %cst_14 : f32 to vector<8x96xf32>
    %33 = arith.maximumf %31, %32 : vector<8x96xf32>
    %34 = arith.truncf %33 : vector<8x96xf32> to vector<8x96xbf16>
    %cst_15 = arith.constant dense<0.000000e+00> : vector<8x16xf32>
    %35 = tpu.matmul %34, %9, %cst_15 {dimension_numbers = #tpu.dot_dimension_numbers<[1], [0], [0], [1], [0, 0, 1, 1], [], []>} : vector<8x96xbf16>, vector<96x16xbf16>, vector<8x16xf32> -> vector<8x16xf32>
    %36 = vector.broadcast %10 : vector<1x16xf32> to vector<8x16xf32>
    %37 = arith.addf %35, %36 : vector<8x16xf32>
    %38 = vector.extract_strided_slice %8 {offsets = [3, 0], sizes = [1, 96], strides = [1, 1]} : vector<8x96xf32> to vector<1x96xf32>
    %39 = vector.broadcast %38 : vector<1x96xf32> to vector<8x96xf32>
    %40 = arith.addf %7, %39 : vector<8x96xf32>
    %cst_16 = arith.constant 0.000000e+00 : f32
    %41 = vector.broadcast %cst_16 : f32 to vector<8x96xf32>
    %42 = arith.maximumf %40, %41 : vector<8x96xf32>
    %43 = arith.truncf %42 : vector<8x96xf32> to vector<8x96xbf16>
    %cst_17 = arith.constant dense<0.000000e+00> : vector<8x16xf32>
    %44 = tpu.matmul %43, %9, %cst_17 {dimension_numbers = #tpu.dot_dimension_numbers<[1], [0], [0], [1], [0, 0, 1, 1], [], []>} : vector<8x96xbf16>, vector<96x16xbf16>, vector<8x16xf32> -> vector<8x16xf32>
    %45 = vector.broadcast %10 : vector<1x16xf32> to vector<8x16xf32>
    %46 = arith.addf %44, %45 : vector<8x16xf32>
    %47 = vector.extract_strided_slice %8 {offsets = [4, 0], sizes = [1, 96], strides = [1, 1]} : vector<8x96xf32> to vector<1x96xf32>
    %48 = vector.broadcast %47 : vector<1x96xf32> to vector<8x96xf32>
    %49 = arith.addf %7, %48 : vector<8x96xf32>
    %cst_18 = arith.constant 0.000000e+00 : f32
    %50 = vector.broadcast %cst_18 : f32 to vector<8x96xf32>
    %51 = arith.maximumf %49, %50 : vector<8x96xf32>
    %52 = arith.truncf %51 : vector<8x96xf32> to vector<8x96xbf16>
    %cst_19 = arith.constant dense<0.000000e+00> : vector<8x16xf32>
    %53 = tpu.matmul %52, %9, %cst_19 {dimension_numbers = #tpu.dot_dimension_numbers<[1], [0], [0], [1], [0, 0, 1, 1], [], []>} : vector<8x96xbf16>, vector<96x16xbf16>, vector<8x16xf32> -> vector<8x16xf32>
    %54 = vector.broadcast %10 : vector<1x16xf32> to vector<8x16xf32>
    %55 = arith.addf %53, %54 : vector<8x16xf32>
    %56 = vector.extract_strided_slice %8 {offsets = [5, 0], sizes = [1, 96], strides = [1, 1]} : vector<8x96xf32> to vector<1x96xf32>
    %57 = vector.broadcast %56 : vector<1x96xf32> to vector<8x96xf32>
    %58 = arith.addf %7, %57 : vector<8x96xf32>
    %cst_20 = arith.constant 0.000000e+00 : f32
    %59 = vector.broadcast %cst_20 : f32 to vector<8x96xf32>
    %60 = arith.maximumf %58, %59 : vector<8x96xf32>
    %61 = arith.truncf %60 : vector<8x96xf32> to vector<8x96xbf16>
    %cst_21 = arith.constant dense<0.000000e+00> : vector<8x16xf32>
    %62 = tpu.matmul %61, %9, %cst_21 {dimension_numbers = #tpu.dot_dimension_numbers<[1], [0], [0], [1], [0, 0, 1, 1], [], []>} : vector<8x96xbf16>, vector<96x16xbf16>, vector<8x16xf32> -> vector<8x16xf32>
    %63 = vector.broadcast %10 : vector<1x16xf32> to vector<8x16xf32>
    %64 = arith.addf %62, %63 : vector<8x16xf32>
    %65 = vector.extract_strided_slice %8 {offsets = [6, 0], sizes = [1, 96], strides = [1, 1]} : vector<8x96xf32> to vector<1x96xf32>
    %66 = vector.broadcast %65 : vector<1x96xf32> to vector<8x96xf32>
    %67 = arith.addf %7, %66 : vector<8x96xf32>
    %cst_22 = arith.constant 0.000000e+00 : f32
    %68 = vector.broadcast %cst_22 : f32 to vector<8x96xf32>
    %69 = arith.maximumf %67, %68 : vector<8x96xf32>
    %70 = arith.truncf %69 : vector<8x96xf32> to vector<8x96xbf16>
    %cst_23 = arith.constant dense<0.000000e+00> : vector<8x16xf32>
    %71 = tpu.matmul %70, %9, %cst_23 {dimension_numbers = #tpu.dot_dimension_numbers<[1], [0], [0], [1], [0, 0, 1, 1], [], []>} : vector<8x96xbf16>, vector<96x16xbf16>, vector<8x16xf32> -> vector<8x16xf32>
    %72 = vector.broadcast %10 : vector<1x16xf32> to vector<8x16xf32>
    %73 = arith.addf %71, %72 : vector<8x16xf32>
    %74 = vector.extract_strided_slice %8 {offsets = [7, 0], sizes = [1, 96], strides = [1, 1]} : vector<8x96xf32> to vector<1x96xf32>
    %75 = vector.broadcast %74 : vector<1x96xf32> to vector<8x96xf32>
    %76 = arith.addf %7, %75 : vector<8x96xf32>
    %cst_24 = arith.constant 0.000000e+00 : f32
    %77 = vector.broadcast %cst_24 : f32 to vector<8x96xf32>
    %78 = arith.maximumf %76, %77 : vector<8x96xf32>
    %79 = arith.truncf %78 : vector<8x96xf32> to vector<8x96xbf16>
    %cst_25 = arith.constant dense<0.000000e+00> : vector<8x16xf32>
    %80 = tpu.matmul %79, %9, %cst_25 {dimension_numbers = #tpu.dot_dimension_numbers<[1], [0], [0], [1], [0, 0, 1, 1], [], []>} : vector<8x96xbf16>, vector<96x16xbf16>, vector<8x16xf32> -> vector<8x16xf32>
    %81 = vector.broadcast %10 : vector<1x16xf32> to vector<8x16xf32>
    %82 = arith.addf %80, %81 : vector<8x16xf32>
    %83 = tpu.concatenate %19, %28, %37, %46, %55, %64, %73, %82 in 1 : vector<8x16xf32>, vector<8x16xf32>, vector<8x16xf32>, vector<8x16xf32>, vector<8x16xf32>, vector<8x16xf32>, vector<8x16xf32>, vector<8x16xf32> -> vector<8x128xf32>
    %c0_26 = arith.constant 0 : index
    %c0_27 = arith.constant 0 : index
    %c0_28 = arith.constant 0 : index
    %84 = vector.load %arg6[%c0_26, %c0_27, %c0_28] : memref<1x8x128xf32, #tpu.memory_space<vmem>>, vector<1x8x128xf32>
    %85 = vector.shape_cast %84 : vector<1x8x128xf32> to vector<8x128xf32>
    %86 = vector.shape_cast %83 : vector<8x128xf32> to vector<1x8x128xf32>
    tpu.vector_store %arg6[%c0_26, %c0_27, %c0_28], %86 {strides = array<i32>} : memref<1x8x128xf32, #tpu.memory_space<vmem>>, vector<1x8x128xf32>,
    return
  }
  func.func @transform_0(%arg0: i32) -> (i32, i32, i32) {
    %c0_i32 = arith.constant 0 : i32
    %c0_i32_0 = arith.constant 0 : i32
    %c0_i32_1 = arith.constant 0 : i32
    return %arg0, %c0_i32, %c0_i32_0 : i32, i32, i32
  }
  func.func @transform_1(%arg0: i32) -> (i32, i32) {
    %c0_i32 = arith.constant 0 : i32
    %c0_i32_0 = arith.constant 0 : i32
    %c0_i32_1 = arith.constant 0 : i32
    return %c0_i32, %c0_i32_0 : i32, i32
  }
  func.func @transform_2(%arg0: i32) -> (i32, i32) {
    %c0_i32 = arith.constant 0 : i32
    %c0_i32_0 = arith.constant 0 : i32
    %c0_i32_1 = arith.constant 0 : i32
    return %c0_i32, %c0_i32_0 : i32, i32
  }
  func.func @transform_3(%arg0: i32) -> (i32, i32) {
    %c0_i32 = arith.constant 0 : i32
    %c0_i32_0 = arith.constant 0 : i32
    %c0_i32_1 = arith.constant 0 : i32
    return %c0_i32, %c0_i32_0 : i32, i32
  }
  func.func @transform_4(%arg0: i32) -> (i32, i32) {
    %c0_i32 = arith.constant 0 : i32
    %c0_i32_0 = arith.constant 0 : i32
    %c0_i32_1 = arith.constant 0 : i32
    return %c0_i32, %c0_i32_0 : i32, i32
  }
  func.func @transform_5(%arg0: i32) -> (i32, i32, i32) {
    %c0_i32 = arith.constant 0 : i32
    %c0_i32_0 = arith.constant 0 : i32
    %c0_i32_1 = arith.constant 0 : i32
    return %arg0, %c0_i32, %c0_i32_0 : i32, i32, i32
  }
}

</mosaic_0001>

<bundles_post_ra>
// kernel: tpu_custom_call.1
= control target key start
LH: loop header
LB: loop body
LE: loop exit
PB: predicated region body
PF: predicated region fallthrough
CT: control target
= control target key end

     0   :  { %10 = vsyncpa [#allocation3], 0  ;;  %s1652_s0 = inlined_call_operand.vmem [shape: bf16[2,8,32], index: 0, kind: input, shape index: {}]   ;;  %s1653_s1 = inlined_call_operand.vmem [shape: bf16[32,192], index: 1, kind: input, shape index: {}]   ;;  %s1654_s2 = inlined_call_operand.vmem [shape: f32[1,96], index: 2, kind: input, shape index: {}]   ;;  %s1655_s3 = inlined_call_operand.vmem [shape: bf16[96,16], index: 3, kind: input, shape index: {}]   ;;  %s1656_s4 = inlined_call_operand.vmem [shape: f32[1,16], index: 4, kind: input, shape index: {}]   ;;  %s1657_s5 = inlined_call_operand.hbm [shape: f32[2,8,128], index: 5, kind: output, shape index: {}]  }
   0x1   :  { %12 = vsyncpa [#allocation3 + $0x1], 0  ;;  %s1346_s18 = smov 0   ;;  %s1348_s19 = smov 0  }
   0x2   :  { %s1350_s20 = smov 0   ;;  %s1352_s21 = smov 0  }
   0x3 LB: > { %s1367_s22 = sadd.s32 4294967295, %s1303_s21   ;;  %s965_s23 = sadd.s32 4294967294, %s1303_s21   ;;  %s1303_s21 = sphi %s1352_s21, %s1663_s21   ;;  %s1299_s20 = sphi %s1350_s20, %s1662_s20   ;;  %s1295_s19 = sphi %s1348_s19, %s1661_s19   ;;  %s1291_s18 = sphi %s1346_s18, %s1660_s18  }
   0x4   : > { %s1371_s24 = sadd.s32 1, %s1303_s21   ;;  %s135_s25 = sadd.s32 1, %s1299_s20 }
   0x5   : > { %s132_s26 = ssub.s32 %s1303_s21, %s1371_s24  ;;  %p145_p0 = scmp.ne.s32.totalorder %s1299_s20, %s1295_s19 }
   0x6   : > { %p133_p1 = scmp.eq.s32.totalorder %s132_s26, 0  ;;  %p146_p2 = scmp.eq.s32.totalorder %s1367_s22, 1 }
   0x7   : > { %p151_p3 = scmp.ne.s32.totalorder %s1295_s19, %s1291_s18  ;;  %p152_p4 = scmp.eq.s32.totalorder %s965_s23, 1 }
   0x8   : > { %s1382_s27 = scalar_select %p133_p1, %s1299_s20, %s135_s25  }
   0x9   : > { %p1384_p5 = por %p146_p2, %p145_p0  ;;  %p1388_p6 = por %p152_p4, %p151_p3 }
   0xa   : > { %p968_p7 = scmp.ge.s32.totalorder %s1303_s21, 1  ;;  %p189_p8 = scmp.lt.s32.totalorder %s1303_s21, 3 }
   0xc   : > { %p190_p9 = pnand %p968_p7, %p189_p8 }
   0xd   : > { %v1229_v0 = vld [vmem:[%s1653_s1 + $0x4] ss:$8 sps:$4 sm:$0xff] (!%p190_p9)   ;;  %p216_p10 = scmp.lt.s32.totalorder (!%p190_p9), %s1367_s22, 1  ;;  %v1231_v1 = vld [vmem:[%s1653_s1] ss:$8 sps:$4 sm:$0xff] (!%p190_p9)   ;;  %v1305_v2 = vmov (!%p190_p9), 0   ;;  %v312_v11 = vlaneseq (!%p190_p9) }
   0xe   : > { %193 = sbr.rel (%p190_p9) target bundleno = 783 (0x30f), region = 40  ;;  %282 = vmatprep.mubr.bf16.mxu0 (!%p190_p9), %v1305_v2  ;;  %250 = vmatprep.subr.bf16.mxu0 (!%p190_p9), %v1229_v0  ;;  %v1232_v3 = vld [vmem:[%s1653_s1 + $0x14] ss:$8 sps:$4 sm:$0xff] (!%p190_p9)   ;;  %v1234_v4 = vld [vmem:[%s1653_s1 + $0x10] ss:$8 sps:$4 sm:$0xff] (!%p190_p9)   ;;  %vm246_vm0 = vcmask (!%p190_p9), 261120  }
   0xf   : > { %251 = vmatpush1.bf16.msra.mxu0 (!%p190_p9), %v1231_v1  ;;  %v1415_v6 = vld [vmem:[%s1655_s3] sm:$0xff] (!%p190_p9)   ;;  %v1306_v7 = vmov (!%p190_p9), 0.0   ;;  %v1424_v8 = vld [vmem:[%s1655_s3 + $0x8] sm:$0xff] (!%p190_p9)   ;;  %v1433_v9 = vld [vmem:[%s1655_s3 + $0x10] sm:$0xff] (!%p190_p9)   ;;  %v313_v13 = vshrl.u32 (!%p190_p9), %v312_v11, 7  ;;  %vm1308_vm1 = vmmov (!%p190_p9), 0  }
  0x10   : > { %252 = vmatprep.subr.bf16.mxu0 (!%p190_p9), %v1232_v3  ;;  %1052 = vmatprep.subr.bf16.mxu1 (!%p190_p9), %v1306_v7  ;;  %v1442_v10 = vld [vmem:[%s1655_s3 + $0x18] sm:$0xff] (!%p190_p9)   ;;  %v1453_v12 = vld [vmem:[%s1655_s3 + $0x20] sm:$0xff] (!%p190_p9)   ;;  %v1462_v16 = vld [vmem:[%s1655_s3 + $0x28] sm:$0xff] (!%p190_p9)   ;;  %vm373_vm2 = vcmask (!%p190_p9), 785408   ;;  %s1309_s25 = smov (!%p190_p9), 16   ;;  %s1310_s26 = smov (!%p190_p9), 48  }
  0x11   : > { %1053 = vmatpush3.bf16.msra.mxu1 (!%p190_p9), %v1415_v6  ;;  %v419_v14 = vsub.s32 (!%p190_p9), 1, %v313_v13  ;;  %v314_v15 = vsub.s32 (!%p190_p9), 0, %v313_v13  ;;  %1064 = vmatprep.mubr.msk.bf16.mxu1 (!%p190_p9), %vm1308_vm1, %v1306_v7  ;;  %v481_v25 = vsub.s32 (!%p190_p9), 2, %v313_v13  ;;  %v543_v28 = vsub.s32 (!%p190_p9), 3, %v313_v13  ;;  %v976_v45 = vld [vmem:[%s1654_s2] ss:$0 sm:$0xff] (!%p190_p9) }
  0x12   : > { %1054 = vmatprep.subr.bf16.mxu1 (!%p190_p9), %v1306_v7  ;;  %v605_v31 = vsub.s32 (!%p190_p9), 4, %v313_v13  ;;  %v667_v34 = vsub.s32 (!%p190_p9), 5, %v313_v13  ;;  %v729_v37 = vsub.s32 (!%p190_p9), 6, %v313_v13  ;;  %v791_v40 = vsub.s32 (!%p190_p9), 7, %v313_v13  ;;  %s1311_s30 = smov (!%p190_p9), 64   ;;  %s1312_s6 = smov (!%p190_p9), 80  }
  0x13   : > { %253 = vmatpush1.bf16.msra.mxu0 (!%p190_p9), %v1234_v4  ;;  %s1313_s7 = smov (!%p190_p9), 96   ;;  %s1314_s8 = smov (!%p190_p9), 112   ;;  %vm879_vm3 = vcmask (!%p190_p9), 130048   ;;  %vm882_vm4 = vcmask (!%p190_p9), 392192   ;;  %vm884_vm5 = vcmask (!%p190_p9), 523264   ;;  %vm886_vm6 = vcmask (!%p190_p9), 654336  }
  0x14   : > { %1068 = vmatprep.subr.bf16.mxu0 (!%p190_p9), %v1306_v7  ;;  %s213_s9 = sand.u32 (!%p190_p9), 1, %s1295_s19   ;;  %s993_s11 = sshll.u32 (!%p190_p9), %s1367_s22, 7  ;;  %vm889_vm7 = vcmask (!%p190_p9), 916480  }
  0x15   : > { %s217_s13 = scalar_select %p216_p10, %s1367_s22, 1  ;;  %1055 = vmatpush3.bf16.msra.mxu1 %v1424_v8 }
  0x16   : > { %1056 = vmatprep.subr.bf16.mxu1 %v1306_v7  ;;  %s969_s10 = sshll.u32 %s213_s9, 3  ;;  %s1610_s16 = scalar_lea.hbm %s1657_s5, %s993_s11 }
  0x17   : > { %s970_s14 = sshll.u32 %s217_s13, 2  ;;  %s215_s12 = scalar_lea.vmem [#allocation2], %s969_s10 }
  0x18   : > { %s219_s17 = scalar_lea.vmem %s1652_s0, %s970_s14  ;;  %s1307_s14 = smov 32  }
  0x19   : > { %v221_v5 = vld [vmem:[%s219_s17] sm:$0xf]  ;;  %1057 = vmatpush3.bf16.msra.mxu1 %v1433_v9  ;;  %s906_s13 = sshll.u32 %s215_s12, 4  ;;  %s893_s22 = scalar_lea.sflag [#allocation3], %s213_s9  ;;  %s1612_s13 = int_to_ptr.vmem [resolvable:$true] %s906_s13 }
  0x1a   : > { %975 = vmatmul.mubr.msk.bf16.vlgmr.msra.gmra.mrb[0].mxu0 %vm246_vm0, %v221_v5  ;;  %1058 = vmatprep.subr.bf16.mxu1 %v1306_v7  ;;  %s1241_s17 = scalar_lea.vmem %s1612_s13, 128  ;;  %s1315_s23 = smov [#allocation2]  }
  0x1b   : > { %1069 = vmatpush3.bf16.msra.mxu0 %v1415_v6  ;;  %1080 = vmatprep.mubr.msk.bf16.mxu0 %vm1308_vm1, %v1306_v7  ;;  %p1242_p11 = scmp.ne.s32.totalorder %s1612_s13, %s1241_s17 }
  0x1c   : > { %1070 = vmatprep.subr.bf16.mxu0 %v1306_v7 }
  0x1d   : > { %1059 = vmatpush3.bf16.msra.mxu1 %v1442_v10  ;;  %p1243_p12 = pnand %p1242_p11, %p1384_p5 }
  0x1e   : > { %1060 = vmatprep.subr.bf16.mxu1 %v1306_v7 }
  0x1f   : > { %1071 = vmatpush3.bf16.msra.mxu0 %v1424_v8  ;;  %p1244_p13 = pneg %p1243_p12 }
  0x20   : > { %1072 = vmatprep.subr.bf16.mxu0 %v1306_v7 }
  0x21   : > { %1061 = vmatpush3.bf16.msra.mxu1 %v1453_v12 }
  0x22   : > { %1062 = vmatprep.subr.bf16.mxu1 %v1306_v7 }
  0x23   : > { %1073 = vmatpush3.bf16.msra.mxu0 %v1433_v9 }
  0x24   : > { %1074 = vmatprep.subr.bf16.mxu0 %v1306_v7 }
  0x25   : > { %1063 = vmatpush3.bf16.msra.mxu1 %v1462_v16 }
  0x26   : > { %1084 = vmatprep.subr.bf16.mxu1 %v1306_v7 }
  0x27   : > { %1075 = vmatpush3.bf16.msra.mxu0 %v1442_v10 }
  0x28   : > { %1076 = vmatprep.subr.bf16.mxu0 %v1306_v7 }
  0x2b   : > { %1077 = vmatpush3.bf16.msra.mxu0 %v1453_v12 }
  0x2c   : > { %1078 = vmatprep.subr.bf16.mxu0 %v1306_v7 }
  0x2f   : > { %1079 = vmatpush3.bf16.msra.mxu0 %v1462_v16 }
  0x30   : > { %1100 = vmatprep.subr.bf16.mxu0 %v1306_v7 }
  0xed   : > { %v284_v17 = vpop.f32.mrb[0].mxu0 }
  0xee   : > { %v286_v18 = vpop.f32.mrb[1].mxu0  ;;  %v420_v19 = vrot.slane %v284_v17, %v419_v14  ;;  %v315_v20 = vrot.slane %v284_v17, %v314_v15  ;;  %v482_v27 = vrot.slane %v284_v17, %v481_v25  ;;  %v544_v30 = vrot.slane %v284_v17, %v543_v28 }
  0xef   : > { %v288_v21 = vpop.f32.mrb[2].mxu0  ;;  %v424_v23 = vrot.slane %v286_v18, %v419_v14  ;;  %v319_v24 = vrot.slane %v286_v18, %v314_v15  ;;  %v486_v26 = vrot.slane %v286_v18, %v481_v25  ;;  %v548_v29 = vrot.slane %v286_v18, %v543_v28 }
  0xf0   : > { %427 = vrot.lane.b32.xlu1 %v420_v19, %s1307_s14  ;;  %322 = vrot.lane.b32.xlu0 %v315_v20, %s1307_s14  ;;  %v289_v22 = vpop.f32.mrb[3].mxu0  ;;  %v610_v32 = vrot.slane %v286_v18, %v605_v31  ;;  %v606_v33 = vrot.slane %v284_v17, %v605_v31  ;;  %v672_v35 = vrot.slane %v286_v18, %v667_v34 }
  0xf1   : > { %v668_v36 = vrot.slane %v284_v17, %v667_v34  ;;  %v734_v38 = vrot.slane %v286_v18, %v729_v37  ;;  %v730_v39 = vrot.slane %v284_v17, %v729_v37  ;;  %v796_v41 = vrot.slane %v286_v18, %v791_v40 }
  0xf2   : > { %v792_v42 = vrot.slane %v284_v17, %v791_v40  ;;  %v1491_v46 = vadd.f32 %v976_v45, %v284_v17 }
  0xf4   : > { %429 = vrot.lane.b32.xlu1 %v424_v23, %s1307_s14  ;;  %324 = vrot.lane.b32.xlu0 %v319_v24, %s1307_s14 }
  0xf8   : > { %491 = vrot.lane.b32.xlu1 %v486_v26, %s1307_s14  ;;  %489 = vrot.lane.b32.xlu0 %v482_v27, %s1307_s14 }
  0xfc   : > { %553 = vrot.lane.b32.xlu1 %v548_v29, %s1307_s14  ;;  %551 = vrot.lane.b32.xlu0 %v544_v30, %s1307_s14 }
 0x100   : > { %615 = vrot.lane.b32.xlu1 %v610_v32, %s1307_s14  ;;  %613 = vrot.lane.b32.xlu0 %v606_v33, %s1307_s14 }
 0x104   : > { %677 = vrot.lane.b32.xlu1 %v672_v35, %s1307_s14  ;;  %675 = vrot.lane.b32.xlu0 %v668_v36, %s1307_s14 }
 0x108   : > { %739 = vrot.lane.b32.xlu1 %v734_v38, %s1307_s14  ;;  %737 = vrot.lane.b32.xlu0 %v730_v39, %s1307_s14 }
 0x10c   : > { %801 = vrot.lane.b32.xlu1 %v796_v41, %s1307_s14  ;;  %799 = vrot.lane.b32.xlu0 %v792_v42, %s1307_s14 }
 0x162   : > { %v428_v43 = vpop.permute.xlu1 %427  ;;  %v323_v44 = vpop.permute.xlu0 %322 }
 0x166   : > { %v430_v47 = vpop.permute.xlu1 %429  ;;  %v325_v48 = vpop.permute.xlu0 %324 }
 0x167   : > { %v431_v49 = vsel %vm246_vm0, %v428_v43, %v430_v47  ;;  %v326_v50 = vsel %vm246_vm0, %v323_v44, %v325_v48 }
 0x168   : > { %v433_v51 = vadd.f32 %v431_v49, %v1491_v46  ;;  %v328_v52 = vadd.f32 %v326_v50, %v1491_v46 }
 0x16a   : > { %v434_v53 = vmax.f32 %v433_v51, 0.0  ;;  %v329_v54 = vmax.f32 %v328_v52, 0.0  ;;  %v492_v57 = vpop.permute.xlu1 %491  ;;  %v490_v58 = vpop.permute.xlu0 %489 }
 0x16b   : > { %v493_v61 = vsel %vm246_vm0, %v490_v58, %v492_v57 }
 0x16c   : > { %v435_v55 = vpack.c.bf16 %v434_v53, %v434_v53  ;;  %v330_v56 = vpack.c.bf16 %v329_v54, %v329_v54  ;;  %v495_v63 = vadd.f32 %v493_v61, %v1491_v46 }
 0x16e   : > { %1081 = vmatmul.mubr.msk.bf16.vlgmr.msra.gmra.mrb[4].mxu0 %vm373_vm2, %v435_v55  ;;  %1065 = vmatmul.mubr.msk.bf16.vlgmr.msra.gmra.mrb[0].mxu1 %vm373_vm2, %v330_v56  ;;  %v554_v59 = vpop.permute.xlu1 %553  ;;  %v552_v60 = vpop.permute.xlu0 %551  ;;  %v496_v1 = vmax.f32 %v495_v63, 0.0 }
 0x16f   : > { %1101 = vmatpush3.bf16.msra.mxu0 %v1415_v6  ;;  %1085 = vmatpush3.bf16.msra.mxu1 %v1415_v6  ;;  %v555_v62 = vsel %vm246_vm0, %v552_v60, %v554_v59 }
 0x170   : > { %1086 = vmatprep.subr.bf16.mxu1 %v1306_v7  ;;  %1102 = vmatprep.subr.bf16.mxu0 %v1306_v7  ;;  %v557_v0 = vadd.f32 %v555_v62, %v1491_v46  ;;  %v497_v3 = vpack.c.bf16 %v496_v1, %v496_v1 }
 0x171   : > { %1096 = vmatprep.mubr.msk.bf16.mxu1 %vm1308_vm1, %v1306_v7  ;;  %1112 = vmatprep.mubr.msk.bf16.mxu0 %vm1308_vm1, %v1306_v7 }
 0x172   : > { %v558_v2 = vmax.f32 %v557_v0, 0.0  ;;  %v616_v5 = vpop.permute.xlu1 %615  ;;  %v614_v11 = vpop.permute.xlu0 %613 }
 0x173   : > { %1103 = vmatpush3.bf16.msra.mxu0 %v1424_v8  ;;  %1087 = vmatpush3.bf16.msra.mxu1 %v1424_v8  ;;  %v617_v15 = vsel %vm246_vm0, %v614_v11, %v616_v5 }
 0x174   : > { %1088 = vmatprep.subr.bf16.mxu1 %v1306_v7  ;;  %1104 = vmatprep.subr.bf16.mxu0 %v1306_v7  ;;  %v559_v4 = vpack.c.bf16 %v558_v2, %v558_v2  ;;  %v619_v18 = vadd.f32 %v617_v15, %v1491_v46 }
 0x176   : > { %v678_v13 = vpop.permute.xlu1 %677  ;;  %v676_v14 = vpop.permute.xlu0 %675  ;;  %v620_v20 = vmax.f32 %v619_v18, 0.0 }
 0x177   : > { %1105 = vmatpush3.bf16.msra.mxu0 %v1433_v9  ;;  %1089 = vmatpush3.bf16.msra.mxu1 %v1433_v9  ;;  %v679_v17 = vsel %vm246_vm0, %v676_v14, %v678_v13 }
 0x178   : > { %1090 = vmatprep.subr.bf16.mxu1 %v1306_v7  ;;  %1106 = vmatprep.subr.bf16.mxu0 %v1306_v7  ;;  %v681_v19 = vadd.f32 %v679_v17, %v1491_v46  ;;  %v621_v22 = vpack.c.bf16 %v620_v20, %v620_v20 }
 0x17a   : > { %v682_v21 = vmax.f32 %v681_v19, 0.0  ;;  %v740_v24 = vpop.permute.xlu1 %739  ;;  %v738_v25 = vpop.permute.xlu0 %737 }
 0x17b   : > { %1107 = vmatpush3.bf16.msra.mxu0 %v1442_v10  ;;  %1091 = vmatpush3.bf16.msra.mxu1 %v1442_v10  ;;  %v741_v27 = vsel %vm246_vm0, %v738_v25, %v740_v24 }
 0x17c   : > { %1092 = vmatprep.subr.bf16.mxu1 %v1306_v7  ;;  %1108 = vmatprep.subr.bf16.mxu0 %v1306_v7  ;;  %v683_v23 = vpack.c.bf16 %v682_v21, %v682_v21 }
 0x17e   : > { %v800_v26 = vpop.permute.xlu0 %799 }
 0x17f   : > { %1109 = vmatpush3.bf16.msra.mxu0 %v1453_v12  ;;  %1093 = vmatpush3.bf16.msra.mxu1 %v1453_v12 }
 0x180   : > { %1094 = vmatprep.subr.bf16.mxu1 %v1306_v7  ;;  %1110 = vmatprep.subr.bf16.mxu0 %v1306_v7 }
 0x183   : > { %1095 = vmatpush3.bf16.msra.mxu1 %v1462_v16  ;;  %1111 = vmatpush3.bf16.msra.mxu0 %v1462_v16 }
 0x184   : > { %1116 = vmatprep.subr.bf16.mxu1 %v1306_v7  ;;  %1132 = vmatprep.subr.bf16.mxu0 %v1306_v7 }
 0x186   : > { %1097 = vmatmul.mubr.msk.bf16.vlgmr.msra.gmra.mrb[4].mxu1 %vm373_vm2, %v497_v3  ;;  %1113 = vmatmul.mubr.msk.bf16.vlgmr.msra.gmra.mrb[8].mxu0 %vm373_vm2, %v559_v4 }
 0x187   : > { %1117 = vmatpush3.bf16.msra.mxu1 %v1415_v6  ;;  %1133 = vmatpush3.bf16.msra.mxu0 %v1415_v6 }
 0x188   : > { %1118 = vmatprep.subr.bf16.mxu1 %v1306_v7  ;;  %1134 = vmatprep.subr.bf16.mxu0 %v1306_v7 }
 0x189   : > { %1128 = vmatprep.mubr.msk.bf16.mxu1 %vm1308_vm1, %v1306_v7  ;;  %1144 = vmatprep.mubr.msk.bf16.mxu0 %vm1308_vm1, %v1306_v7 }
 0x18b   : > { %1119 = vmatpush3.bf16.msra.mxu1 %v1424_v8  ;;  %1135 = vmatpush3.bf16.msra.mxu0 %v1424_v8 }
 0x18c   : > { %1120 = vmatprep.subr.bf16.mxu1 %v1306_v7  ;;  %1136 = vmatprep.subr.bf16.mxu0 %v1306_v7 }
 0x18f   : > { %1121 = vmatpush3.bf16.msra.mxu1 %v1433_v9  ;;  %1137 = vmatpush3.bf16.msra.mxu0 %v1433_v9 }
 0x190   : > { %1122 = vmatprep.subr.bf16.mxu1 %v1306_v7  ;;  %1138 = vmatprep.subr.bf16.mxu0 %v1306_v7 }
 0x193   : > { %1123 = vmatpush3.bf16.msra.mxu1 %v1442_v10  ;;  %1139 = vmatpush3.bf16.msra.mxu0 %v1442_v10 }
 0x194   : > { %1124 = vmatprep.subr.bf16.mxu1 %v1306_v7  ;;  %1140 = vmatprep.subr.bf16.mxu0 %v1306_v7 }
 0x197   : > { %1125 = vmatpush3.bf16.msra.mxu1 %v1453_v12  ;;  %1141 = vmatpush3.bf16.msra.mxu0 %v1453_v12 }
 0x198   : > { %1126 = vmatprep.subr.bf16.mxu1 %v1306_v7  ;;  %1142 = vmatprep.subr.bf16.mxu0 %v1306_v7 }
 0x19b   : > { %1127 = vmatpush3.bf16.msra.mxu1 %v1462_v16  ;;  %1143 = vmatpush3.bf16.msra.mxu0 %v1462_v16 }
 0x19c   : > { %1148 = vmatprep.subr.bf16.mxu1 %v1306_v7  ;;  %1164 = vmatprep.subr.bf16.mxu0 %v1306_v7 }
 0x19e   : > { %1129 = vmatmul.mubr.msk.bf16.vlgmr.msra.gmra.mrb[8].mxu1 %vm373_vm2, %v621_v22  ;;  %1145 = vmatmul.mubr.msk.bf16.vlgmr.msra.gmra.mrb[12].mxu0 %vm373_vm2, %v683_v23 }
 0x19f   : > { %1149 = vmatpush3.bf16.msra.mxu1 %v1415_v6  ;;  %1165 = vmatpush3.bf16.msra.mxu0 %v1415_v6  ;;  %v802_v6 = vpop.permute.xlu1 %801 }
 0x1a0   : > { %1150 = vmatprep.subr.bf16.mxu1 %v1306_v7  ;;  %1166 = vmatprep.subr.bf16.mxu0 %v1306_v7  ;;  %v803_v28 = vsel %vm246_vm0, %v800_v26, %v802_v6 }
 0x1a1   : > { %1160 = vmatprep.mubr.msk.bf16.mxu1 %vm1308_vm1, %v1306_v7  ;;  %1176 = vmatprep.mubr.msk.bf16.mxu0 %vm1308_vm1, %v1306_v7  ;;  %v805_v29 = vadd.f32 %v803_v28, %v1491_v46 }
 0x1a3   : > { %1151 = vmatpush3.bf16.msra.mxu1 %v1424_v8  ;;  %1167 = vmatpush3.bf16.msra.mxu0 %v1424_v8  ;;  %v743_v8 = vadd.f32 %v741_v27, %v1491_v46  ;;  %v806_v30 = vmax.f32 %v805_v29, 0.0 }
 0x1a4   : > { %1152 = vmatprep.subr.bf16.mxu1 %v1306_v7  ;;  %1168 = vmatprep.subr.bf16.mxu0 %v1306_v7 }
 0x1a5   : > { %v807_v31 = vpack.c.bf16 %v806_v30, %v806_v30 }
 0x1a7   : > { %1153 = vmatpush3.bf16.msra.mxu1 %v1433_v9  ;;  %1169 = vmatpush3.bf16.msra.mxu0 %v1433_v9  ;;  %v744_v9 = vmax.f32 %v743_v8, 0.0 }
 0x1a8   : > { %1154 = vmatprep.subr.bf16.mxu1 %v1306_v7  ;;  %1170 = vmatprep.subr.bf16.mxu0 %v1306_v7 }
 0x1ab   : > { %1155 = vmatpush3.bf16.msra.mxu1 %v1442_v10  ;;  %1171 = vmatpush3.bf16.msra.mxu0 %v1442_v10  ;;  %v745_v10 = vpack.c.bf16 %v744_v9, %v744_v9 }
 0x1ac   : > { %1156 = vmatprep.subr.bf16.mxu1 %v1306_v7  ;;  %1172 = vmatprep.subr.bf16.mxu0 %v1306_v7 }
 0x1af   : > { %1157 = vmatpush3.bf16.msra.mxu1 %v1453_v12  ;;  %1173 = vmatpush3.bf16.msra.mxu0 %v1453_v12  ;;  %v977_v12 = vld [vmem:[%s1656_s4] ss:$0 sm:$0xff] }
 0x1b0   : > { %1158 = vmatprep.subr.bf16.mxu1 %v1306_v7  ;;  %1174 = vmatprep.subr.bf16.mxu0 %v1306_v7 }
 0x1b3   : > { %1159 = vmatpush3.bf16.msra.mxu1 %v1462_v16  ;;  %1175 = vmatpush3.bf16.msra.mxu0 %v1462_v16 }
 0x1b6   : > { %1161 = vmatmul.mubr.msk.bf16.vlgmr.msra.gmra.mrb[12].mxu1 %vm373_vm2, %v745_v10  ;;  %1177 = vmatmul.mubr.msk.bf16.vlgmr.msra.gmra.mrb[16].mxu0 %vm373_vm2, %v807_v31 }
 0x241   : > { %v411_v32 = vpop.f32.mrb[0].mxu1  ;;  %v473_v33 = vpop.f32.mrb[4].mxu0 }
 0x242   : > { %v474_v34 = vadd.f32 %v977_v12, %v473_v33  ;;  %v1066_v35 = vpop.f32.mrb[1].mxu1  ;;  %v1082_v36 = vpop.f32.mrb[5].mxu0  ;;  %v412_v11 = vadd.f32 %v977_v12, %v411_v32 }
 0x243   : > { %v414_v7 = vpop.f32.mrb[2].mxu1  ;;  %v476_v37 = vpop.f32.mrb[6].mxu0 }
 0x244   : > { %v1067_v38 = vpop.f32.mrb[3].mxu1  ;;  %852 = vrot.lane.b32.xlu0 %v474_v34, %s1309_s25  ;;  %v1083_v16 = vpop.f32.mrb[7].mxu0  ;;  %s1245_s25 = sshll.u32 %s1315_s23, 4  ;;  %s1246_s25 = int_to_ptr.vmem [resolvable:$false] %s1245_s25 }
 0x245   : > { %p1248_p0 = scmp.lt.s32.totalorder %s1612_s13, %s1246_s25 }
 0x259   : > { %v535_v39 = vpop.f32.mrb[4].mxu1  ;;  %v597_v40 = vpop.f32.mrb[8].mxu0 }
 0x25a   : > { %v536_v41 = vadd.f32 %v977_v12, %v535_v39  ;;  %v598_v42 = vadd.f32 %v977_v12, %v597_v40  ;;  %v1098_v43 = vpop.f32.mrb[5].mxu1  ;;  %v1114_v44 = vpop.f32.mrb[9].mxu0 }
 0x25b   : > { %v538_v45 = vpop.f32.mrb[6].mxu1  ;;  %v600_v46 = vpop.f32.mrb[10].mxu0 }
 0x25c   : > { %856 = vrot.lane.b32.xlu1 %v536_v41, %s1307_s14  ;;  %v1099_v47 = vpop.f32.mrb[7].mxu1  ;;  %860 = vrot.lane.b32.xlu0 %v598_v42, %s1310_s26  ;;  %v1115_v48 = vpop.f32.mrb[11].mxu0  ;;  %s1247_s26 = scalar_lea.vmem %s1246_s25, 256 }
 0x25d   : > { %p1249_p1 = scmp.lt.s32.totalorder %s1247_s26, %s1241_s17 }
 0x25f   : > { %p1250_p2 = por %p1249_p1, %p1248_p0 }
 0x261   : > { %p1251_p3 = pnand %p1250_p2, %p1244_p13 }
 0x271   : > { %v659_v49 = vpop.f32.mrb[8].mxu1  ;;  %v721_v50 = vpop.f32.mrb[12].mxu0 }
 0x272   : > { %v660_v51 = vadd.f32 %v977_v12, %v659_v49  ;;  %v722_v52 = vadd.f32 %v977_v12, %v721_v50  ;;  %v1130_v53 = vpop.f32.mrb[9].mxu1  ;;  %v1146_v54 = vpop.f32.mrb[13].mxu0 }
 0x273   : > { %v662_v55 = vpop.f32.mrb[10].mxu1  ;;  %v724_v56 = vpop.f32.mrb[14].mxu0 }
 0x274   : > { %864 = vrot.lane.b32.xlu1 %v660_v51, %s1311_s30  ;;  %v1131_v57 = vpop.f32.mrb[11].mxu1  ;;  %868 = vrot.lane.b32.xlu0 %v722_v52, %s1312_s6  ;;  %v1147_v58 = vpop.f32.mrb[15].mxu0 }
 0x289   : > { %v783_v59 = vpop.f32.mrb[12].mxu1  ;;  %v845_v60 = vpop.f32.mrb[16].mxu0 }
 0x28a   : > { %v784_v61 = vadd.f32 %v977_v12, %v783_v59  ;;  %v846_v62 = vadd.f32 %v977_v12, %v845_v60  ;;  %v1162_v63 = vpop.f32.mrb[13].mxu1  ;;  %v1178_v0 = vpop.f32.mrb[17].mxu0 }
 0x28b   : > { %v786_v1 = vpop.f32.mrb[14].mxu1  ;;  %v848_v2 = vpop.f32.mrb[18].mxu0 }
 0x28c   : > { %872 = vrot.lane.b32.xlu1 %v784_v61, %s1313_s7  ;;  %v1163_v3 = vpop.f32.mrb[15].mxu1  ;;  %876 = vrot.lane.b32.xlu0 %v846_v62, %s1314_s8  ;;  %v1179_v4 = vpop.f32.mrb[19].mxu0 }
 0x2b6   : > { %v853_v5 = vpop.permute.xlu0 %852 }
 0x2b7   : > { %v880_v14 = vsel %vm879_vm3, %v412_v11, %v853_v5 }
 0x2ce   : > { %v857_v13 = vpop.permute.xlu1 %856  ;;  %v861_v15 = vpop.permute.xlu0 %860 }
 0x2cf   : > { %v881_v17 = vsel %vm246_vm0, %v880_v14, %v857_v13 }
 0x2d0   : > { %v883_v19 = vsel %vm882_vm4, %v881_v17, %v861_v15 }
 0x2e6   : > { %v865_v18 = vpop.permute.xlu1 %864  ;;  %v869_v20 = vpop.permute.xlu0 %868 }
 0x2e7   : > { %v885_v21 = vsel %vm884_vm5, %v883_v19, %v865_v18 }
 0x2e8   : > { %v887_v22 = vsel %vm886_vm6, %v885_v21, %v869_v20 }
 0x2fe   : > { %v873_v23 = vpop.permute.xlu1 %872  ;;  %v877_v24 = vpop.permute.xlu0 %876 }
 0x2ff   : > { %v888_v25 = vsel %vm373_vm2, %v887_v22, %v873_v23 }
 0x300   : > { %v890_v6 = vsel %vm889_vm7, %v888_v25, %v877_v24 }
 0x301   : > { %891 = vst [vmem:[%s215_s12] sm:$0xff] %v890_v6 }
 0x302   : > { %1254 = shalt.err (!%p1251_p3)
}
 0x303   : > { %s1255_s30 = scalar_lea.hbm %s1610_s16, 128  ;;  %s1259_s8 = scalar_lea.hbm %s1657_s5, 256 }
 0x304   : > { %p1256_p4 = scmp.ne.s32.totalorder %s1610_s16, %s1255_s30  ;;  %p1260_p9 = scmp.lt.u32.totalorder %s1610_s16, %s1657_s5 }
 0x305   : > { %p1261_p10 = scmp.lt.u32.totalorder %s1259_s8, %s1255_s30  ;;  %p1263_p12 = scmp.lt.u32.totalorder %s1255_s30, %s1610_s16 }
 0x306   : > { %p1257_p7 = pnand %p1256_p4, %p1384_p5 }
 0x307   : > { %p1262_p11 = por %p1261_p10, %p1260_p9 }
 0x308   : > { %p1258_p8 = pneg %p1257_p7 }
 0x309   : > { %p1264_p13 = por %p1263_p12, %p1262_p11 }
 0x30b   : > { %p1265_p0 = pnand %p1264_p13, %p1258_p8 }
 0x30d   : > { %1268 = shalt.err (!%p1265_p0)
}
 0x30e   : > { %1180 = dma.vmem_to_hbm [thread:$0]  (%p1384_p5), %s1612_s13, 128, %s1610_s16, %s893_s22  }
 0x30f PF: > { %p1186_p1 = scmp.ge.s32.totalorder %s1303_s21, 2  ;;  %s918_s11 = sand.u32 1, %s1291_s18  }
 0x310   : > { %s919_s12 = scalar_lea.sflag [#allocation3], %s918_s11 }
 0x311   : > { %p1183_p2 = pnand %p1186_p1, %p1388_p6 }
 0x313   : > { %1286 = dma.done.wait (!%p1183_p2), %s919_s12, 128  }
 0x314   : > { %1288 = vsyncadd (!%p1183_p2), %s919_s12, 4294967168  ;;  %p15_p3 = scmp.ge.s32.totalorder %s1371_s24, 4   ;;  %s1660_s18 = smov %s1295_s19 }
 0x315   : > { %s1661_s19 = smov %s1299_s20  ;;  %s1662_s20 = smov %s1382_s27 }
 0x316   : > { %s1663_s21 = smov %s1371_s24  ;;  %17 = sbr.rel (!%p15_p3) target bundleno = 3 (0x3), region = 75 }
 0x31d   :  { %924 = vsyncpa [#allocation3], 1 }
 0x31e   :  { %926 = vsyncpa [#allocation3 + $0x1], 1 }

</bundles_post_ra>
